<compile_context>
chip_gen: v5e
topology: v5e:2x2
jax: 0.10.0
libtpu: 0.0.40
codegen_flags: <defaults>
</compile_context>

<pallas_src>
import jax
import jax.numpy as jnp
from jax import lax
from jax.experimental import pallas as pl
from jax.experimental.pallas import tpu as pltpu


def lstm_kernel(x_ref, wg_ref, hc0_ref, biases_ref, wout_ref, out_ref,
                xg_ref, h_ref, c_ref):
    """One (batch-block, time-chunk) grid step of the LSTM recurrence.

    x_ref      : (Tc, Bc, E)   bf16  embedded tokens for this chunk (time-major)
    wg_ref     : (E+H, 4H)     bf16  [W_ih^T ; W_hh^T]
    hc0_ref    : (2, Bc, H)    f32   [h0 ; c0] for this batch block
    biases_ref : (2, CW)       f32   row0[:4H] = b_ih + b_hh, row1[:P] = b_out
    wout_ref   : (H, P)        bf16  W_out^T zero-padded to P lanes (P % 128 == 0)
    out_ref    : (Bc, P)       f32   lane-dense output block
    xg_ref     : (Tc*Bc, 4H)   f32   VMEM scratch: per-chunk gate pre-activations
    h_ref,c_ref: (Bc, H)       f32   VMEM scratch: recurrent state carried across chunks
    """
    Tc, Bc, E = x_ref.shape
    _, H = h_ref.shape
    H4 = 4 * H
    P = out_ref.shape[1]
    ti = pl.program_id(1)

    # New batch block starts at time-chunk 0: (re)load the initial state.
    @pl.when(ti == 0)
    def _():
        h_ref[...] = hc0_ref[0]
        c_ref[...] = hc0_ref[1]

    wih = wg_ref[0:E, :]                      # (E, 4H)  bf16
    whh = wg_ref[E:E + H, :]                  # (H, 4H)  bf16
    bias = biases_ref[0:1, 0:H4]              # (1, 4H)  f32

    # Hoisted input projection for the whole chunk: one bf16 MXU pass with the bias
    # folded in (f32 accumulate); stored to VMEM so the recurrence only keeps one
    # (Bc, 4H) row slice live per step.
    x2d = x_ref[...].reshape(Tc * Bc, E)      # free reshape: Bc is a sublane multiple
    xg_ref[...] = jnp.dot(x2d, wih, preferred_element_type=jnp.float32) + bias

    def step(t, carry):
        h, c = carry
        # Only the recurrent h @ W_hh^T matmul sits on the serial critical path.
        # TODO(synk): hold W_hh^T weight-stationary via pltpu.matmul_push_rhs /
        #             matmul_acc_lhs to drop the per-step RHS push at long T.
        hg = jnp.dot(h.astype(jnp.bfloat16), whh,
                     preferred_element_type=jnp.float32)           # (Bc, 4H) f32
        row = pl.multiple_of(t * Bc, 8)                            # aligned row slice
        gates = xg_ref[pl.ds(row, Bc), :] + hg                     # (Bc, 4H) f32

        # Full-vreg activations (EUP is a free slot here), then static lane slices.
        # PyTorch gate order along 4H: [i, f, g, o].
        sig = jax.nn.sigmoid(gates)
        th = jnp.tanh(gates)
        i_g = sig[:, 0 * H:1 * H]
        f_g = sig[:, 1 * H:2 * H]
        g_g = th[:, 2 * H:3 * H]
        o_g = sig[:, 3 * H:4 * H]

        c = f_g * c + i_g * g_g
        h = o_g * jnp.tanh(c)
        return h, c

    # Short fixed trip count -> unrolled fori_loop (LLO scheduling visibility) while
    # xg stays VMEM-resident instead of living in vregs.
    h, c = lax.fori_loop(0, Tc, step, (h_ref[...], c_ref[...]), unroll=True)
    h_ref[...] = h
    c_ref[...] = c

    # Last time chunk of this batch block: dropout is identity at inference; fc_out
    # on the final hidden state, lane-dense unmasked store.
    @pl.when(ti == pl.num_programs(1) - 1)
    def _():
        bout = biases_ref[1:2, 0:P]
        out_ref[...] = (jnp.dot(h.astype(jnp.bfloat16), wout_ref[...],
                                preferred_element_type=jnp.float32)
                        + bout).astype(out_ref.dtype)


def _largest_divisor_at_most(n, cap):
    cap = max(1, min(n, int(cap)))
    while n % cap:
        cap -= 1
    return cap


def _pick_t_chunk(T, B, E, H, vmem_budget_bytes=24 << 20):
    """Time-chunk length whose streamed x (double-buffered bf16) plus f32 xg scratch
    fits a budget sized for the smallest-VMEM generation (v7x: 64 MiB/TC, ~32 MiB
    scoped). v5e/v6e (128 MiB) can roughly double this budget."""
    per_t = 2 * (B * E * 2) + B * 4 * H * 4
    return _largest_divisor_at_most(T, vmem_budget_bytes // max(per_t, 1))


def simple_lstm_forward(tokens, embed_w, w_ih, w_hh, b_ih, b_hh,
                        h0, c0, w_out, b_out, *, t_chunk=None, b_block=None):
    """tokens: (B, T) int32.  Returns (B, output_dim) float32."""
    B, T = tokens.shape
    E = embed_w.shape[1]
    H = h0.shape[1]
    out_dim = w_out.shape[0]

    # --- glue: pad batch to a sublane multiple so every per-step slice is aligned ----
    B_pad = ((B + 7) // 8) * 8
    if B_pad != B:
        pad = B_pad - B
        tokens = jnp.pad(tokens, ((0, pad), (0, 0)))
        h0 = jnp.pad(h0, ((0, pad), (0, 0)))
        c0 = jnp.pad(c0, ((0, pad), (0, 0)))

    out_pad = ((out_dim + 127) // 128) * 128           # lane-dense output width
    CW = max(4 * H, out_pad)

    if t_chunk is None:
        t_chunk = _pick_t_chunk(T, B_pad, E, H)
    assert T % t_chunk == 0
    if b_block is None:
        # Split the batch across the two v7x TensorCores when it is large enough.
        half = B_pad // 2
        b_block = half if (B_pad >= 16 and half % 8 == 0) else B_pad
    assert B_pad % b_block == 0 and b_block % 8 == 0

    # --- glue: embedding gather (time-major) + packed / bf16 weight layout -----------
    x = jnp.take(embed_w, tokens.T, axis=0).astype(jnp.bfloat16)              # (T,B,E)
    w_gate = jnp.concatenate([w_ih.T, w_hh.T], axis=0).astype(jnp.bfloat16)   # (E+H,4H)
    hc0 = jnp.stack([h0, c0], axis=0).astype(jnp.float32)                     # (2,B,H)
    biases = jnp.zeros((2, CW), jnp.float32)
    biases = biases.at[0, :4 * H].set(b_ih + b_hh)
    biases = biases.at[1, :out_dim].set(b_out)
    wout = (jnp.zeros((H, out_pad), jnp.float32)
            .at[:, :out_dim].set(w_out.T).astype(jnp.bfloat16))

    grid = (B_pad // b_block, T // t_chunk)            # (parallel batch, arbitrary time)

    out_padded = pl.pallas_call(
        lstm_kernel,
        out_shape=jax.ShapeDtypeStruct((B_pad, out_pad), jnp.float32),
        grid=grid,
        in_specs=[
            pl.BlockSpec((t_chunk, b_block, E), lambda bi, ti: (ti, bi, 0)),  # x chunk
            pl.BlockSpec((E + H, 4 * H), lambda bi, ti: (0, 0)),              # [Wih;Whh]^T
            pl.BlockSpec((2, b_block, H), lambda bi, ti: (0, bi, 0)),         # [h0;c0]
            pl.BlockSpec((2, CW), lambda bi, ti: (0, 0)),                     # biases
            pl.BlockSpec((H, out_pad), lambda bi, ti: (0, 0)),                # W_out^T
        ],
        out_specs=pl.BlockSpec((b_block, out_pad), lambda bi, ti: (bi, 0)),
        scratch_shapes=[
            pltpu.VMEM((t_chunk * b_block, 4 * H), jnp.float32),   # xg for one chunk
            pltpu.VMEM((b_block, H), jnp.float32),                 # h carry
            pltpu.VMEM((b_block, H), jnp.float32),                 # c carry
        ],
        compiler_params=pltpu.CompilerParams(
            dimension_semantics=("parallel", "arbitrary"),
            # Explicit budget with headroom under v7x's 64 MiB/TC physical VMEM;
            # v5e/v6e (128 MiB) simply get deeper effective prefetch for free.
            vmem_limit_bytes=48 * 1024 * 1024,
        ),
    )(x, w_gate, hc0, biases, wout)

    return out_padded[:B, :out_dim]


def reference_forward(tokens, embed_w, w_ih, w_hh, b_ih, b_hh, h0, c0, w_out, b_out):
    """Pure-JAX f32 reference (same math) for a correctness check."""
    x = jnp.take(embed_w, tokens, axis=0)            # (B, T, E)
    H = h0.shape[1]

    def step(carry, x_t):
        h, c = carry
        gates = x_t @ w_ih.T + h @ w_hh.T + b_ih + b_hh
        i = jax.nn.sigmoid(gates[:, 0 * H:1 * H])
        f = jax.nn.sigmoid(gates[:, 1 * H:2 * H])
        g = jnp.tanh(gates[:, 2 * H:3 * H])
        o = jax.nn.sigmoid(gates[:, 3 * H:4 * H])
        c = f * c + i * g
        h = o * jnp.tanh(c)
        return (h, c), None

    (h_T, _), _ = jax.lax.scan(step, (h0, c0), jnp.transpose(x, (1, 0, 2)))
    return h_T @ w_out.T + b_out


if __name__ == "__main__":
    # Small, deterministic shapes consistent with the module.
    VOCAB, E, H, OUT = 100, 32, 32, 8
    B, T = 16, 8          # B=16 exercises the 2-block "parallel" batch axis

    key = jax.random.PRNGKey(0)
    ks = jax.random.split(key, 10)

    # Parameters (deterministic synthetic init).
    embed_w = jax.random.normal(ks[0], (VOCAB, E), jnp.float32) * 0.1
    w_ih = jax.random.normal(ks[1], (4 * H, E), jnp.float32) * 0.1
    w_hh = jax.random.normal(ks[2], (4 * H, H), jnp.float32) * 0.1
    b_ih = jax.random.normal(ks[3], (4 * H,), jnp.float32) * 0.1
    b_hh = jax.random.normal(ks[4], (4 * H,), jnp.float32) * 0.1
    w_out = jax.random.normal(ks[5], (OUT, H), jnp.float32) * 0.1
    b_out = jax.random.normal(ks[6], (OUT,), jnp.float32) * 0.1

    # xavier_normal_ on (1, B, H): std = sqrt(2 / (B*H + H))
    xav_std = (2.0 / (B * H + H)) ** 0.5
    h0 = jax.random.normal(ks[7], (B, H), jnp.float32) * xav_std
    c0 = jax.random.normal(ks[8], (B, H), jnp.float32) * xav_std

    # Input token ids (batch_size, seq_length)
    tokens = jax.random.randint(ks[9], (B, T), 0, VOCAB, dtype=jnp.int32)

    # t_chunk=4 -> grid (2, 2): exercises both the time-chunk carry and the batch split.
    out = simple_lstm_forward(tokens, embed_w, w_ih, w_hh, b_ih, b_hh,
                              h0, c0, w_out, b_out, t_chunk=4)
    out = jax.block_until_ready(out)

    ref = reference_forward(tokens, embed_w, w_ih, w_hh, b_ih, b_hh,
                            h0, c0, w_out, b_out)
    assert out.shape == (B, OUT)
    # bf16 matmul operands vs. an all-f32 reference -> tolerance loosened accordingly.
    max_err = float(jnp.max(jnp.abs(out - ref)))
    assert jnp.allclose(out, ref, atol=2e-2, rtol=2e-2), f"mismatch vs reference: {max_err}"

    print("KERNEL_OK")
</pallas_src>

<mosaic_0001>
module attributes {stable_mosaic.version = 11 : i64} {
  func.func @lstm_kernel(%arg0: i32, %arg1: i32, %arg2: memref<4x8x32xbf16, #tpu.memory_space<vmem>>, %arg3: memref<64x128xbf16, #tpu.memory_space<vmem>>, %arg4: memref<2x8x32xf32, #tpu.memory_space<vmem>>, %arg5: memref<2x128xf32, #tpu.memory_space<vmem>>, %arg6: memref<32x128xbf16, #tpu.memory_space<vmem>>, %arg7: memref<8x128xf32, #tpu.memory_space<vmem>>, %arg8: memref<32x128xf32, #tpu.memory_space<vmem>>, %arg9: memref<8x32xf32, #tpu.memory_space<vmem>>, %arg10: memref<8x32xf32, #tpu.memory_space<vmem>>) attributes {dimension_semantics = [#tpu.dimension_semantics<parallel>, #tpu.dimension_semantics<arbitrary>], iteration_bounds = array<i64: 2, 2>, scalar_prefetch = 0 : i64, scratch_operands = 3 : i64, tpu.core_type = #tpu.core_type<tc>, window_params = [{transform_indices = @transform_0, window_bounds = array<i64: 4, 8, 32>}, {pipeline_mode = #tpu.pipeline_mode<synchronous>, transform_indices = @transform_1, window_bounds = array<i64: 64, 128>}, {transform_indices = @transform_2, window_bounds = array<i64: 2, 8, 32>}, {pipeline_mode = #tpu.pipeline_mode<synchronous>, transform_indices = @transform_3, window_bounds = array<i64: 2, 128>}, {pipeline_mode = #tpu.pipeline_mode<synchronous>, transform_indices = @transform_4, window_bounds = array<i64: 32, 128>}, {transform_indices = @transform_5, window_bounds = array<i64: 8, 128>}]} {
    %c0_i32 = arith.constant 0 : i32
    %0 = arith.cmpi eq, %arg1, %c0_i32 : i32
    %1 = arith.extui %0 : i1 to i32
    %c0_i32_0 = arith.constant 0 : i32
    %2 = arith.cmpi ne, %1, %c0_i32_0 : i32
    scf.if %2 {
      %c0_36 = arith.constant 0 : index
      %c0_37 = arith.constant 0 : index
      %c0_38 = arith.constant 0 : index
      %107 = vector.load %arg4[%c0_36, %c0_37, %c0_38] : memref<2x8x32xf32, #tpu.memory_space<vmem>>, vector<1x8x32xf32>
      %108 = vector.shape_cast %107 : vector<1x8x32xf32> to vector<8x32xf32>
      %c0_39 = arith.constant 0 : index
      %c0_40 = arith.constant 0 : index
      %109 = vector.load %arg9[%c0_39, %c0_40] : memref<8x32xf32, #tpu.memory_space<vmem>>, vector<8x32xf32>
      tpu.vector_store %arg9[%c0_39, %c0_40], %108 {strides = array<i32>} : memref<8x32xf32, #tpu.memory_space<vmem>>, vector<8x32xf32>,
      %c1 = arith.constant 1 : index
      %c0_41 = arith.constant 0 : index
      %c0_42 = arith.constant 0 : index
      %110 = vector.load %arg4[%c1, %c0_41, %c0_42] : memref<2x8x32xf32, #tpu.memory_space<vmem>>, vector<1x8x32xf32>
      %111 = vector.shape_cast %110 : vector<1x8x32xf32> to vector<8x32xf32>
      %c0_43 = arith.constant 0 : index
      %c0_44 = arith.constant 0 : index
      %112 = vector.load %arg10[%c0_43, %c0_44] : memref<8x32xf32, #tpu.memory_space<vmem>>, vector<8x32xf32>
      tpu.vector_store %arg10[%c0_43, %c0_44], %111 {strides = array<i32>} : memref<8x32xf32, #tpu.memory_space<vmem>>, vector<8x32xf32>,
    } else {
    }
    %c0 = arith.constant 0 : index
    %c0_1 = arith.constant 0 : index
    %3 = vector.load %arg3[%c0, %c0_1] : memref<64x128xbf16, #tpu.memory_space<vmem>>, vector<32x128xbf16>
    %c32 = arith.constant 32 : index
    %c0_2 = arith.constant 0 : index
    %4 = vector.load %arg3[%c32, %c0_2] : memref<64x128xbf16, #tpu.memory_space<vmem>>, vector<32x128xbf16>
    %c0_3 = arith.constant 0 : index
    %c0_4 = arith.constant 0 : index
    %5 = vector.load %arg5[%c0_3, %c0_4] : memref<2x128xf32, #tpu.memory_space<vmem>>, vector<1x128xf32>
    %c0_5 = arith.constant 0 : index
    %c0_6 = arith.constant 0 : index
    %c0_7 = arith.constant 0 : index
    %6 = vector.load %arg2[%c0_5, %c0_6, %c0_7] : memref<4x8x32xbf16, #tpu.memory_space<vmem>>, vector<4x8x32xbf16>
    %7 = vector.shape_cast %6 : vector<4x8x32xbf16> to vector<32x32xbf16>
    %cst = arith.constant dense<0.000000e+00> : vector<32x128xf32>
    %8 = tpu.matmul %7, %3, %cst {dimension_numbers = #tpu.dot_dimension_numbers<[1], [0], [0], [1], [0, 0, 1, 1], [], []>} : vector<32x32xbf16>, vector<32x128xbf16>, vector<32x128xf32> -> vector<32x128xf32>
    %9 = vector.broadcast %5 : vector<1x128xf32> to vector<32x128xf32>
    %10 = arith.addf %8, %9 : vector<32x128xf32>
    %c0_8 = arith.constant 0 : index
    %c0_9 = arith.constant 0 : index
    %11 = vector.load %arg8[%c0_8, %c0_9] : memref<32x128xf32, #tpu.memory_space<vmem>>, vector<32x128xf32>
    tpu.vector_store %arg8[%c0_8, %c0_9], %10 {strides = array<i32>} : memref<32x128xf32, #tpu.memory_space<vmem>>, vector<32x128xf32>,
    %c0_10 = arith.constant 0 : index
    %c0_11 = arith.constant 0 : index
    %12 = vector.load %arg9[%c0_10, %c0_11] : memref<8x32xf32, #tpu.memory_space<vmem>>, vector<8x32xf32>
    %c0_12 = arith.constant 0 : index
    %c0_13 = arith.constant 0 : index
    %13 = vector.load %arg10[%c0_12, %c0_13] : memref<8x32xf32, #tpu.memory_space<vmem>>, vector<8x32xf32>
    %c0_i32_14 = arith.constant 0 : i32
    %14 = arith.truncf %12 : vector<8x32xf32> to vector<8x32xbf16>
    %cst_15 = arith.constant dense<0.000000e+00> : vector<8x128xf32>
    %15 = tpu.matmul %14, %4, %cst_15 {dimension_numbers = #tpu.dot_dimension_numbers<[1], [0], [0], [1], [0, 0, 1, 1], [], []>} : vector<8x32xbf16>, vector<32x128xbf16>, vector<8x128xf32> -> vector<8x128xf32>
    %c8_i32 = arith.constant 8 : i32
    %16 = arith.muli %c0_i32_14, %c8_i32 : i32
    %17 = tpu.assume_multiple %16, 8 : i32
    %18 = arith.index_cast %17 : i32 to index
    %c0_16 = arith.constant 0 : index
    %19 = vector.load %arg8[%18, %c0_16] : memref<32x128xf32, #tpu.memory_space<vmem>>, vector<8x128xf32>
    %20 = arith.addf %19, %15 : vector<8x128xf32>
    %21 = arith.negf %20 : vector<8x128xf32>
    %22 = math.exp %21 : vector<8x128xf32>
    %cst_17 = arith.constant 1.000000e+00 : f32
    %23 = vector.broadcast %cst_17 : f32 to vector<8x128xf32>
    %24 = arith.addf %23, %22 : vector<8x128xf32>
    %25 = arith.divf %23, %24 : vector<8x128xf32>
    %26 = math.tanh %20 : vector<8x128xf32>
    %27 = vector.extract_strided_slice %25 {offsets = [0, 0], sizes = [8, 32], strides = [1, 1]} : vector<8x128xf32> to vector<8x32xf32>
    %28 = vector.extract_strided_slice %25 {offsets = [0, 32], sizes = [8, 32], strides = [1, 1]} : vector<8x128xf32> to vector<8x32xf32>
    %29 = vector.extract_strided_slice %26 {offsets = [0, 64], sizes = [8, 32], strides = [1, 1]} : vector<8x128xf32> to vector<8x32xf32>
    %30 = vector.extract_strided_slice %25 {offsets = [0, 96], sizes = [8, 32], strides = [1, 1]} : vector<8x128xf32> to vector<8x32xf32>
    %31 = arith.mulf %28, %13 : vector<8x32xf32>
    %32 = arith.mulf %27, %29 : vector<8x32xf32>
    %33 = arith.addf %31, %32 : vector<8x32xf32>
    %34 = math.tanh %33 : vector<8x32xf32>
    %35 = arith.mulf %30, %34 : vector<8x32xf32>
    %c1_i32 = arith.constant 1 : i32
    %36 = arith.truncf %35 : vector<8x32xf32> to vector<8x32xbf16>
    %cst_18 = arith.constant dense<0.000000e+00> : vector<8x128xf32>
    %37 = tpu.matmul %36, %4, %cst_18 {dimension_numbers = #tpu.dot_dimension_numbers<[1], [0], [0], [1], [0, 0, 1, 1], [], []>} : vector<8x32xbf16>, vector<32x128xbf16>, vector<8x128xf32> -> vector<8x128xf32>
    %c8_i32_19 = arith.constant 8 : i32
    %38 = arith.muli %c1_i32, %c8_i32_19 : i32
    %39 = tpu.assume_multiple %38, 8 : i32
    %40 = arith.index_cast %39 : i32 to index
    %c0_20 = arith.constant 0 : index
    %41 = vector.load %arg8[%40, %c0_20] : memref<32x128xf32, #tpu.memory_space<vmem>>, vector<8x128xf32>
    %42 = arith.addf %41, %37 : vector<8x128xf32>
    %43 = arith.negf %42 : vector<8x128xf32>
    %44 = math.exp %43 : vector<8x128xf32>
    %cst_21 = arith.constant 1.000000e+00 : f32
    %45 = vector.broadcast %cst_21 : f32 to vector<8x128xf32>
    %46 = arith.addf %45, %44 : vector<8x128xf32>
    %47 = arith.divf %45, %46 : vector<8x128xf32>
    %48 = math.tanh %42 : vector<8x128xf32>
    %49 = vector.extract_strided_slice %47 {offsets = [0, 0], sizes = [8, 32], strides = [1, 1]} : vector<8x128xf32> to vector<8x32xf32>
    %50 = vector.extract_strided_slice %47 {offsets = [0, 32], sizes = [8, 32], strides = [1, 1]} : vector<8x128xf32> to vector<8x32xf32>
    %51 = vector.extract_strided_slice %48 {offsets = [0, 64], sizes = [8, 32], strides = [1, 1]} : vector<8x128xf32> to vector<8x32xf32>
    %52 = vector.extract_strided_slice %47 {offsets = [0, 96], sizes = [8, 32], strides = [1, 1]} : vector<8x128xf32> to vector<8x32xf32>
    %53 = arith.mulf %50, %33 : vector<8x32xf32>
    %54 = arith.mulf %49, %51 : vector<8x32xf32>
    %55 = arith.addf %53, %54 : vector<8x32xf32>
    %56 = math.tanh %55 : vector<8x32xf32>
    %57 = arith.mulf %52, %56 : vector<8x32xf32>
    %c2_i32 = arith.constant 2 : i32
    %58 = arith.truncf %57 : vector<8x32xf32> to vector<8x32xbf16>
    %cst_22 = arith.constant dense<0.000000e+00> : vector<8x128xf32>
    %59 = tpu.matmul %58, %4, %cst_22 {dimension_numbers = #tpu.dot_dimension_numbers<[1], [0], [0], [1], [0, 0, 1, 1], [], []>} : vector<8x32xbf16>, vector<32x128xbf16>, vector<8x128xf32> -> vector<8x128xf32>
    %c8_i32_23 = arith.constant 8 : i32
    %60 = arith.muli %c2_i32, %c8_i32_23 : i32
    %61 = tpu.assume_multiple %60, 8 : i32
    %62 = arith.index_cast %61 : i32 to index
    %c0_24 = arith.constant 0 : index
    %63 = vector.load %arg8[%62, %c0_24] : memref<32x128xf32, #tpu.memory_space<vmem>>, vector<8x128xf32>
    %64 = arith.addf %63, %59 : vector<8x128xf32>
    %65 = arith.negf %64 : vector<8x128xf32>
    %66 = math.exp %65 : vector<8x128xf32>
    %cst_25 = arith.constant 1.000000e+00 : f32
    %67 = vector.broadcast %cst_25 : f32 to vector<8x128xf32>
    %68 = arith.addf %67, %66 : vector<8x128xf32>
    %69 = arith.divf %67, %68 : vector<8x128xf32>
    %70 = math.tanh %64 : vector<8x128xf32>
    %71 = vector.extract_strided_slice %69 {offsets = [0, 0], sizes = [8, 32], strides = [1, 1]} : vector<8x128xf32> to vector<8x32xf32>
    %72 = vector.extract_strided_slice %69 {offsets = [0, 32], sizes = [8, 32], strides = [1, 1]} : vector<8x128xf32> to vector<8x32xf32>
    %73 = vector.extract_strided_slice %70 {offsets = [0, 64], sizes = [8, 32], strides = [1, 1]} : vector<8x128xf32> to vector<8x32xf32>
    %74 = vector.extract_strided_slice %69 {offsets = [0, 96], sizes = [8, 32], strides = [1, 1]} : vector<8x128xf32> to vector<8x32xf32>
    %75 = arith.mulf %72, %55 : vector<8x32xf32>
    %76 = arith.mulf %71, %73 : vector<8x32xf32>
    %77 = arith.addf %75, %76 : vector<8x32xf32>
    %78 = math.tanh %77 : vector<8x32xf32>
    %79 = arith.mulf %74, %78 : vector<8x32xf32>
    %c3_i32 = arith.constant 3 : i32
    %80 = arith.truncf %79 : vector<8x32xf32> to vector<8x32xbf16>
    %cst_26 = arith.constant dense<0.000000e+00> : vector<8x128xf32>
    %81 = tpu.matmul %80, %4, %cst_26 {dimension_numbers = #tpu.dot_dimension_numbers<[1], [0], [0], [1], [0, 0, 1, 1], [], []>} : vector<8x32xbf16>, vector<32x128xbf16>, vector<8x128xf32> -> vector<8x128xf32>
    %c8_i32_27 = arith.constant 8 : i32
    %82 = arith.muli %c3_i32, %c8_i32_27 : i32
    %83 = tpu.assume_multiple %82, 8 : i32
    %84 = arith.index_cast %83 : i32 to index
    %c0_28 = arith.constant 0 : index
    %85 = vector.load %arg8[%84, %c0_28] : memref<32x128xf32, #tpu.memory_space<vmem>>, vector<8x128xf32>
    %86 = arith.addf %85, %81 : vector<8x128xf32>
    %87 = arith.negf %86 : vector<8x128xf32>
    %88 = math.exp %87 : vector<8x128xf32>
    %cst_29 = arith.constant 1.000000e+00 : f32
    %89 = vector.broadcast %cst_29 : f32 to vector<8x128xf32>
    %90 = arith.addf %89, %88 : vector<8x128xf32>
    %91 = arith.divf %89, %90 : vector<8x128xf32>
    %92 = math.tanh %86 : vector<8x128xf32>
    %93 = vector.extract_strided_slice %91 {offsets = [0, 0], sizes = [8, 32], strides = [1, 1]} : vector<8x128xf32> to vector<8x32xf32>
    %94 = vector.extract_strided_slice %91 {offsets = [0, 32], sizes = [8, 32], strides = [1, 1]} : vector<8x128xf32> to vector<8x32xf32>
    %95 = vector.extract_strided_slice %92 {offsets = [0, 64], sizes = [8, 32], strides = [1, 1]} : vector<8x128xf32> to vector<8x32xf32>
    %96 = vector.extract_strided_slice %91 {offsets = [0, 96], sizes = [8, 32], strides = [1, 1]} : vector<8x128xf32> to vector<8x32xf32>
    %97 = arith.mulf %94, %77 : vector<8x32xf32>
    %98 = arith.mulf %93, %95 : vector<8x32xf32>
    %99 = arith.addf %97, %98 : vector<8x32xf32>
    %100 = math.tanh %99 : vector<8x32xf32>
    %101 = arith.mulf %96, %100 : vector<8x32xf32>
    %c4_i32 = arith.constant 4 : i32
    %c0_30 = arith.constant 0 : index
    %c0_31 = arith.constant 0 : index
    %102 = vector.load %arg9[%c0_30, %c0_31] : memref<8x32xf32, #tpu.memory_space<vmem>>, vector<8x32xf32>
    tpu.vector_store %arg9[%c0_30, %c0_31], %101 {strides = array<i32>} : memref<8x32xf32, #tpu.memory_space<vmem>>, vector<8x32xf32>,
    %c0_32 = arith.constant 0 : index
    %c0_33 = arith.constant 0 : index
    %103 = vector.load %arg10[%c0_32, %c0_33] : memref<8x32xf32, #tpu.memory_space<vmem>>, vector<8x32xf32>
    tpu.vector_store %arg10[%c0_32, %c0_33], %99 {strides = array<i32>} : memref<8x32xf32, #tpu.memory_space<vmem>>, vector<8x32xf32>,
    %c1_i32_34 = arith.constant 1 : i32
    %104 = arith.cmpi eq, %arg1, %c1_i32_34 : i32
    %105 = arith.extui %104 : i1 to i32
    %c0_i32_35 = arith.constant 0 : i32
    %106 = arith.cmpi ne, %105, %c0_i32_35 : i32
    scf.if %106 {
      %c1 = arith.constant 1 : index
      %c0_36 = arith.constant 0 : index
      %107 = vector.load %arg5[%c1, %c0_36] : memref<2x128xf32, #tpu.memory_space<vmem>>, vector<1x128xf32>
      %108 = arith.truncf %101 : vector<8x32xf32> to vector<8x32xbf16>
      %c0_37 = arith.constant 0 : index
      %c0_38 = arith.constant 0 : index
      %109 = vector.load %arg6[%c0_37, %c0_38] : memref<32x128xbf16, #tpu.memory_space<vmem>>, vector<32x128xbf16>
      %cst_39 = arith.constant dense<0.000000e+00> : vector<8x128xf32>
      %110 = tpu.matmul %108, %109, %cst_39 {dimension_numbers = #tpu.dot_dimension_numbers<[1], [0], [0], [1], [0, 0, 1, 1], [], []>} : vector<8x32xbf16>, vector<32x128xbf16>, vector<8x128xf32> -> vector<8x128xf32>
      %111 = vector.broadcast %107 : vector<1x128xf32> to vector<8x128xf32>
      %112 = arith.addf %110, %111 : vector<8x128xf32>
      %c0_40 = arith.constant 0 : index
      %c0_41 = arith.constant 0 : index
      %113 = vector.load %arg7[%c0_40, %c0_41] : memref<8x128xf32, #tpu.memory_space<vmem>>, vector<8x128xf32>
      tpu.vector_store %arg7[%c0_40, %c0_41], %112 {strides = array<i32>} : memref<8x128xf32, #tpu.memory_space<vmem>>, vector<8x128xf32>,
    } else {
    }
    return
  }
  func.func @transform_0(%arg0: i32, %arg1: i32) -> (i32, i32, i32) {
    %c0_i32 = arith.constant 0 : i32
    %c0_i32_0 = arith.constant 0 : i32
    return %arg1, %arg0, %c0_i32 : i32, i32, i32
  }
  func.func @transform_1(%arg0: i32, %arg1: i32) -> (i32, i32) {
    %c0_i32 = arith.constant 0 : i32
    %c0_i32_0 = arith.constant 0 : i32
    %c0_i32_1 = arith.constant 0 : i32
    return %c0_i32, %c0_i32_0 : i32, i32
  }
  func.func @transform_2(%arg0: i32, %arg1: i32) -> (i32, i32, i32) {
    %c0_i32 = arith.constant 0 : i32
    %c0_i32_0 = arith.constant 0 : i32
    %c0_i32_1 = arith.constant 0 : i32
    return %c0_i32, %arg0, %c0_i32_0 : i32, i32, i32
  }
  func.func @transform_3(%arg0: i32, %arg1: i32) -> (i32, i32) {
    %c0_i32 = arith.constant 0 : i32
    %c0_i32_0 = arith.constant 0 : i32
    %c0_i32_1 = arith.constant 0 : i32
    return %c0_i32, %c0_i32_0 : i32, i32
  }
  func.func @transform_4(%arg0: i32, %arg1: i32) -> (i32, i32) {
    %c0_i32 = arith.constant 0 : i32
    %c0_i32_0 = arith.constant 0 : i32
    %c0_i32_1 = arith.constant 0 : i32
    return %c0_i32, %c0_i32_0 : i32, i32
  }
  func.func @transform_5(%arg0: i32, %arg1: i32) -> (i32, i32) {
    %c0_i32 = arith.constant 0 : i32
    %c0_i32_0 = arith.constant 0 : i32
    return %arg0, %c0_i32 : i32, i32
  }
}

</mosaic_0001>

<bundles_post_ra>
// kernel: tpu_custom_call.1
= control target key start
LH: loop header
LB: loop body
LE: loop exit
PB: predicated region body
PF: predicated region fallthrough
CT: control target
= control target key end

     0   :  { %s1700_s0 = inlined_call_operand.hbm [shape: bf16[8,16,32], index: 0, kind: input, shape index: {}]   ;;  %s1701_s1 = inlined_call_operand.hbm [shape: bf16[64,128], index: 1, kind: input, shape index: {}]   ;;  %s1702_s2 = inlined_call_operand.hbm [shape: f32[2,16,32], index: 2, kind: input, shape index: {}]   ;;  %s1703_s3 = inlined_call_operand.vmem [shape: f32[2,128], index: 3, kind: input, shape index: {}]   ;;  %s1704_s4 = inlined_call_operand.hbm [shape: bf16[32,128], index: 4, kind: input, shape index: {}]   ;;  %s1705_s5 = inlined_call_operand.hbm [shape: f32[16,128], index: 5, kind: output, shape index: {}]  }
   0x1   :  { %1716 = sst [smem:[#allocation24_spill]] %s1701_s1 }
   0x2   :  { %1717 = sst [smem:[#allocation25_spill]] %s1703_s3 }
   0x3   :  { %1718 = sst [smem:[#allocation26_spill]] %s1705_s5 }
   0x4   :  { %10 = vsyncpa [#allocation6], 0 }
   0x5   :  { %12 = vsyncpa [#allocation6 + $0x1], 0 }
   0x6   :  { %13 = vsyncpa [#allocation9], 0 }
   0x7   :  { %14 = vsyncpa [#allocation7], 0 }
   0x8   :  { %16 = vsyncpa [#allocation7 + $0x1], 0  ;;  %s1400_s18 = smov 0   ;;  %s1402_s19 = smov 0  }
   0x9   :  { %s1404_s20 = smov 0   ;;  %s1406_s21 = smov 0  }
   0xa   :  { %s1408_s22 = smov 0   ;;  %s1410_s23 = smov 0  }
   0xb   :  { %s1412_s24 = smov 0   ;;  %s1414_s25 = smov 0  }
   0xc   :  { %s1416_s26 = smov 0   ;;  %s1418_s27 = smov 0  }
   0xd   :  { %s1420_s28 = smov 0  }
   0xe LB: > { %1719 = sst [smem:[#allocation18_spill]] %s1317_s18  ;;  %s1454_s29 = sadd.s32 4294967295, %s1357_s28   ;;  %s1357_s28 = sphi %s1420_s28, %s22_s28   ;;  %s1353_s27 = sphi %s1418_s27, %s1751_s27   ;;  %s1349_s26 = sphi %s1416_s26, %s1742_s26   ;;  %s1345_s25 = sphi %s1414_s25, %s1750_s25   ;;  %s1341_s24 = sphi %s1412_s24, %s1741_s24   ;;  %s1337_s23 = sphi %s1410_s23, %s1749_s23   ;;  %s1333_s22 = sphi %s1408_s22, %s1748_s22   ;;  %s1329_s21 = sphi %s1406_s21, %s1747_s21   ;;  %s1325_s20 = sphi %s1404_s20, %s1746_s20   ;;  %s1321_s19 = sphi %s1402_s19, %s1745_s19   ;;  %s1317_s18 = sphi %s1400_s18, %s1744_s18  }
   0xf   : > { %1720 = sst [smem:[#allocation19_spill]] %s1345_s25  ;;  %s856_s30 = sadd.s32 4294967294, %s1357_s28  }
  0x10   : > { %1721 = sst [smem:[#allocation20_spill]] %s1349_s26  ;;  %p56_p0 = scmp.ne.s32.totalorder %s1333_s22, %s1329_s21 }
  0x11   : > { %p57_p1 = scmp.eq.s32.totalorder %s1454_s29, 0  ;;  %p103_p2 = scmp.ne.s32.totalorder %s1321_s19, %s1317_s18 }
  0x12   : > { %p169_p3 = scmp.eq.s32.totalorder %s1454_s29, 3  ;;  %p175_p5 = scmp.eq.s32.totalorder %s856_s30, 3 }
  0x13   : > { %p1464_p4 = por %p57_p1, %p56_p0  ;;  %p1470_p6 = por %p103_p2, %p57_p1 }
  0x14   : > { %p857_p7 = scmp.ge.s32.totalorder %s1357_s28, 1  ;;  %p1475_p8 = por %p175_p5, %p103_p2 }
  0x15   : > { %p182_p9 = scmp.lt.s32.totalorder %s1357_s28, 5  ;;  %s1726_s1 = sld [smem:[#allocation24_spill]] }
  0x16   : > { %s1724_s8 = scalar_select %p1475_p8, 1, 0 }
  0x17   : > { %p1483_p10 = pnand %p857_p7, %p182_p9  ;;  %s1359_s13 = smov [#allocation8]  }
  0x18   : > { %1725 = sst [smem:[#allocation21_spill]] %s1724_s8  ;;  %s195_s14 = sshll.u32 %s1359_s13, 4  ;;  %s196_s14 = int_to_ptr.vmem [resolvable:$true] %s195_s14 }
  0x19   : > { %p946_p11 = pneg %p1483_p10  ;;  %s1706_s16 = smov 64  }
  0x1a   : > { %s1708_s17 = smov 4   ;;  %s31_s21 = sadd.s32 1, %s1349_s26 }
  0x1b   : > { %s193_s11 = sshll.u32 %s1726_s1, 4  ;;  %p1491_p12 = pnand %p946_p11, %p57_p1  ;;  %s194_s11 = int_to_ptr.hbm [resolvable:$true] %s193_s11 }
  0x1c   : > { %p32_p13 = scmp.ge.s32.totalorder %s31_s21, 2  ;;  %s34_s30 = sadd.s32 1, %s1353_s27 }
  0x1d   : > { %949 = dma.hbm_to_vmem [thread:$0]  (!%p1491_p12), %s194_s11, 512, %s196_s14, [#allocation9], %s1706_s16, %s1706_s16, %s1708_s17  }
  0x1e   : > { %s43_s9 = sadd.s32 1, %s1337_s23  ;;  %p50_p0 = scmp.ne.s32.totalorder %s1337_s23, %s1333_s22 }
  0x1f   : > { %s1753_s21 = smov (%p32_p13, %s31_s21), 0  ;;  %s1755_s30 = smov (!%p32_p13, %s34_s30), %s1353_s27 }
  0x20   : > { %1729 = sst [smem:[#allocation22_spill]] %s1753_s21  ;;  %s38_s10 = ssub.s32 %s1349_s26, %s1753_s21 }
  0x21   : > { %p51_p2 = scmp.eq.s32.totalorder %s1357_s28, 0  ;;  %p36_p5 = scmp.ge.s32.totalorder %s1755_s30, 2 }
  0x22   : > { %p966_p7 = scmp.lt.s32.totalorder %s1357_s28, 4  ;;  %s226_s13 = sand.u32 1, %s1357_s28  }
  0x23   : > { %p1514_p9 = por %p51_p2, %p50_p0  ;;  %s1757_s30 = smov (%p36_p5, %s1755_s30), 0 }
  0x24   : > { %1731 = sst [smem:[#allocation23_spill]] %s1757_s30  ;;  %s228_s14 = sand.u32 1, %s1337_s23  }
  0x25   : > { %s39_s16 = ssub.s32 %s1353_s27, %s1757_s30  ;;  %s861_s17 = sshll.u32 %s228_s14, 4 }
  0x26   : > { %s40_s1 = sor.u32 %s39_s16, %s38_s10  ;;  %p88_p11 = scmp.eq.s32.totalorder %s39_s16, 0 }
  0x27   : > { %p41_p13 = scmp.eq.s32.totalorder %s40_s1, 0  ;;  %s923_s21 = sshll.u32 %s1349_s26, 3 }
  0x28   : > { %s230_s8 = scalar_lea.vmem [#allocation5], %s861_s17  ;;  %s235_s25 = sadd.s32 %s1353_s27, %s923_s21 }
  0x29   : > { %s240_s18 = sshll.u32 %s230_s8, 4  ;;  %s864_s3 = sshll.u32 %s235_s25, 2  ;;  %s241_s18 = int_to_ptr.vmem [resolvable:$true] %s240_s18 }
  0x2a   : > { %s1526_s5 = scalar_select %p41_p13, %s1337_s23, %s43_s9  }
  0x2b   : > { %p954_p0 = pnand %p966_p7, %p1514_p9  ;;  %s237_s1 = scalar_lea.hbm %s1700_s0, %s864_s3 }
  0x2c   : > { %s238_s8 = sshll.u32 %s237_s1, 4  ;;  %s210_s9 = sshll.u32 %s1704_s4, 4  ;;  %s239_s8 = int_to_ptr.hbm [resolvable:$true] %s238_s8  ;;  %s211_s9 = int_to_ptr.hbm [resolvable:$true] %s210_s9 }
  0x2d   : > { %s1539_s30 = scalar_lea.sflag [#allocation6], %s226_s13  ;;  %s1362_s25 = smov 128  }
  0x2e   : > { %s1732_s11 = smov 4   ;;  %s1733_s26 = smov 64  }
  0x2f   : > { %956 = dma.hbm_to_vmem [thread:$0]  (!%p954_p0), %s239_s8, 256, %s241_s18, %s1539_s30, %s1362_s25, %s1733_s26, %s1732_s11  }
  0x30   : > { %s1363_s14 = smov [#allocation11]   ;;  %s90_s3 = sadd.s32 1, %s1325_s20 }
  0x31   : > { %s212_s10 = sshll.u32 %s1363_s14, 4  ;;  %p97_p5 = scmp.ne.s32.totalorder %s1325_s20, %s1321_s19  ;;  %s213_s10 = int_to_ptr.vmem [resolvable:$true] %s212_s10 }
  0x32   : > { %952 = dma.hbm_to_vmem [thread:$0]  (!%p1491_p12), %s211_s9, 256, %s213_s10, [#allocation9], %s1733_s26, %s1733_s26, %s1732_s11  }
  0x33   : > { %s1554_s13 = scalar_select %p88_p11, %s1325_s20, %s90_s3  }
  0x34   : > { %p99_p9 = por %p97_p5, %p51_p2  ;;  %p1560_p13 = por %p169_p3, %p97_p5 }
  0x35   : > { %s252_s1 = sand.u32 1, %s1325_s20   ;;  %s866_s15 = sshll.u32 %s1353_s27, 3 }
  0x36   : > { %s865_s8 = sshll.u32 %s252_s1, 4  ;;  %s258_s26 = scalar_lea.hbm %s1702_s2, %s866_s15 }
  0x37   : > { %s259_s9 = sshll.u32 %s258_s26, 4  ;;  %s254_s16 = scalar_lea.vmem [#allocation10], %s865_s8  ;;  %s260_s9 = int_to_ptr.hbm [resolvable:$true] %s259_s9 }
  0x38   : > { %s261_s11 = sshll.u32 %s254_s16, 4  ;;  %p957_p12 = pnand %p966_p7, %p99_p9  ;;  %s262_s11 = int_to_ptr.vmem [resolvable:$true] %s261_s11 }
  0x39   : > { %s1364_s14 = smov 256   ;;  %s1365_s10 = smov 8  }
  0x3a   : > { %959 = dma.hbm_to_vmem [thread:$0]  (!%p957_p12), %s260_s9, 256, %s262_s11, %s1539_s30, %s1364_s14, %s1362_s25, %s1365_s10  }
  0x3b   : > { %273 = sbr.rel (%p1483_p10) target bundleno = 2696 (0xa88), region = 40  ;;  %s275_s3 = sand.u32 (!%p1483_p10), 1, %s1454_s29  }
  0x3c   : > { %s277_s1 = sand.u32 (!%p1483_p10), 1, %s1333_s22   ;;  %s276_s15 = scalar_lea.sflag (!%p1483_p10), [#allocation6], %s275_s3 }
  0x3d   : > { %s1576_s17 = sshll.u32 (!%p1483_p10), %s277_s1, 4 }
  0x3e   : > { %s279_s8 = scalar_lea.vmem (!%p1483_p10), [#allocation5], %s1576_s17 }
  0x40   : > { %1296 = dma.done.wait (%p1464_p4), %s276_s15, 256  }
  0x41   : > { %1298 = vsyncadd (%p1464_p4), %s276_s15, 4294967040 }
  0x42   : > { %1300 = dma.done.wait (%p57_p1), [#allocation9], 512  }
  0x43   : > { %1302 = vsyncadd (%p57_p1), [#allocation9], 4294966784  ;;  %s1588_s12 = sand.u32 1, %s1321_s19  }
  0x44   : > { %s870_s30 = sshll.u32 %s1588_s12, 4 }
  0x45   : > { %s294_s25 = scalar_lea.vmem [#allocation10], %s870_s30 }
  0x46   : > { %1304 = dma.done.wait (%p1470_p6), %s276_s15, 256  }
  0x47   : > { %1306 = vsyncadd (%p1470_p6), %s276_s15, 4294967040 }
  0x48   : > { %1308 = dma.done.wait (%p57_p1), [#allocation9], 256  }
  0x49   : > { %1310 = vsyncadd (%p57_p1), [#allocation9], 4294967040  ;;  %s872_s6 = sshll.u32 %s1588_s12, 3  ;;  %p873_p3 = scmp.ne.s32.totalorder %s1341_s24, 0 }
  0x4a   : > { %s1600_s21 = scalar_lea.vmem [#allocation12], %s872_s6 }
  0x4b   : > { %337 = sbr.rel (%p873_p3) target bundleno = 83 (0x53), region = 60 }
  0x50   : > { %v338_v0 = vld [vmem:[%s294_s25] sm:$0xff]  ;;  %vm339_vm0 = vcmask 261120   ;;  %v874_v1 = vld [vmem:[%s294_s25 + $0x8] sm:$0xff] }
  0x51   : > { %340 = vst.msk [vmem:[#allocation3] sm:$0xff] %vm339_vm0, %v338_v0 }
  0x52   : > { %343 = vst.msk [vmem:[#allocation4] sm:$0xff] %vm339_vm0, %v874_v1 }
  0x53 PF: > { %v925_v2 = vld [vmem:[#allocation8 + $0x8] sm:$0xff]  ;;  %v927_v3 = vld [vmem:[#allocation8 + $0x18] sm:$0xff]  ;;  %v924_v4 = vld [vmem:[#allocation8] sm:$0xff]  ;;  %vm380_vm1 = vcmask 261120   ;;  %s1735_s26 = sld [smem:[#allocation25_spill]]  ;;  %s1366_s9 = smov 64  }
  0x54   : > { %393 = vmatpush.bf16.msra.mxu0 %v925_v2  ;;  %434 = vmatpush.bf16.msra.mxu1 %v927_v3  ;;  %v926_v5 = vld [vmem:[#allocation8 + $0x10] sm:$0xff]  ;;  %s1367_s16 = smov 32   ;;  %v929_v2 = vld [vmem:[%s279_s8 + $0x8] sm:$0xff]  ;;  %s1368_s11 = smov 96  }
  0x55   : > { %497 = vmatpush.bf16.msra.mxu2 %v927_v3  ;;  %557 = vmatpush.bf16.msra.mxu3 %v927_v3  ;;  %v928_v7 = vld [vmem:[%s279_s8] sm:$0xff]  ;;  %p909_p1 = scmp.ne.s32.totalorder %s1341_s24, 1 }
  0x56   : > { %s1369_s14 = smov (!%p909_p1), 32   ;;  %s1736_s1 = sld [smem:[#allocation25_spill]] (!%p909_p1) }
  0x58   : > { %v410_v6 = vld [vmem:[#allocation3] sm:$0xff]  ;;  %394 = vmatpush.bf16.msra.mxu0 %v924_v4  ;;  %435 = vmatpush.bf16.msra.mxu1 %v926_v5 }
  0x59   : > { %v412_v8 = vpack.c.bf16 %v410_v6, %v410_v6  ;;  %498 = vmatpush.bf16.msra.mxu2 %v926_v5  ;;  %558 = vmatpush.bf16.msra.mxu3 %v926_v5  ;;  %v1610_v9 = vld [vmem:[%s1735_s26] ss:$0 sm:$0xff]  ;;  %v411_v16 = vld [vmem:[#allocation4] sm:$0xff] }
  0x5b   : > { %891 = vmatmul.msk.bf16.vlgmr.msra.gmra.mxu0 %vm380_vm1, %v928_v7  ;;  %901 = vmatmul.msk.bf16.vlgmr.msra.gmra.mxu1 %vm380_vm1, %v412_v8 }
  0x5c   : > { %617 = vmatpush.bf16.msrb.mxu1 %v927_v3 }
  0x60   : > { %618 = vmatpush.bf16.msrb.mxu1 %v926_v5 }
  0x6b   : > { %892 = vmatmul.msk.bf16.gmra.mxu0 %vm380_vm1, %v929_v2 }
  0xd8   : > { %v396_v10 = vpop.f32.mrf.mxu0  ;;  %v437_v11 = vpop.f32.mrf.mxu1 }
  0xd9   : > { %v397_v12 = vadd.f32 %v1610_v9, %v396_v10 }
  0xdb   : > { %v442_v13 = vadd.f32 %v437_v11, %v397_v12 }
  0xdd   : > { %1070 = vtanh.f32 %v442_v13  ;;  %v902_v17 = vmul.f32 -1.442695, %v442_v13 }
  0xdf   : > { %1072 = vpow2.f32 %v902_v17 }
  0xe0   : > { %v439_v14 = vpop.f32.mrf.mxu1  ;;  %v398_v41 = vpop.f32.mrf.mxu0 }
  0xe1   : > { %v399_v42 = vadd.f32 %v1610_v9, %v398_v41 }
  0xe3   : > { %v1071_v15 = vpop.eup %1070 }
  0xe4   : > { %469 = vrot.lane.b32.xlu0 %v1071_v15, %s1366_s9 }
  0xe5   : > { %v1073_v18 = vpop.eup %1072 }
  0xe6   : > { %v446_v19 = vadd.f32 1.0, %v1073_v18 }
  0xe8   : > { %1074 = vrcp.f32 %v446_v19  ;;  %v458_v25 = vand.u32 2147483648, %v446_v19  ;;  %vm452_vm3 = vweird.f32 %v446_v19  ;;  %v456_v26 = vand.u32 2147483647, %v446_v19  ;;  %v401_v7 = vpop.f32.mrf.mxu0 }
  0xe9   : > { %v402_v8 = vadd.f32 %v1610_v9, %v401_v7 }
  0xea   : > { %v459_v28 = vor.u32 1.1754944e-38, %v458_v25  ;;  %vm457_vm5 = vcmp.eq.f32.partialorder %v456_v26, 8.507059e+37 }
  0xec   : > { %464 = vrot.lane.b32.xlu0 %v411_v16, %s1367_s16 }
  0xee   : > { %v1075_v20 = vpop.eup %1074 }
  0xef   : > { %v448_v21 = vmul.f32 %v1075_v20, %v446_v19  ;;  %vm453_vm2 = vweird.f32 %v1075_v20 }
  0xf0   : > { %vm454_vm4 = vmor %vm452_vm3, %vm453_vm2 }
  0xf1   : > { %v449_v22 = vsub.f32 1.0, %v448_v21 }
  0xf3   : > { %v450_v23 = vmul.f32 %v1075_v20, %v449_v22 }
  0xf5   : > { %v451_v24 = vadd.f32 %v1075_v20, %v450_v23 }
  0xf7   : > { %v455_v27 = vsel %vm454_vm4, %v1075_v20, %v451_v24 }
  0xf8   : > { %v460_v30 = vsel %vm457_vm5, %v459_v28, %v455_v27 }
 0x156   : > { %v470_v29 = vpop.permute.xlu0 %469 }
 0x157   : > { %v472_v31 = vmul.f32 %v470_v29, %v460_v30 }
 0x159   : > { %474 = vrot.lane.b32.xlu1 %v472_v31, %s1367_s16 }
 0x15e   : > { %v465_v32 = vpop.permute.xlu0 %464 }
 0x15f   : > { %v467_v33 = vmul.f32 %v465_v32, %v460_v30 }
 0x1cb   : > { %v475_v34 = vpop.permute.xlu1 %474 }
 0x1cc   : > { %v477_v35 = vadd.f32 %v475_v34, %v467_v33 }
 0x1ce   : > { %1076 = vtanh.f32 %v477_v35 }
 0x1d4   : > { %v1077_v36 = vpop.eup %1076 }
 0x1d5   : > { %480 = vrot.lane.b32.xlu1 %v1077_v36, %s1366_s9 }
 0x247   : > { %v481_v37 = vpop.permute.xlu1 %480 }
 0x248   : > { %v483_v38 = vmul.f32 %v481_v37, %v460_v30  ;;  %v403_v37 = vpop.f32.mrf.mxu0 }
 0x24a   : > { %v484_v39 = vpack.c.bf16 %v483_v38, %v483_v38  ;;  %v404_v38 = vadd.f32 %v1610_v9, %v403_v37 }
 0x24c   : > { %486 = vrot.lane.b32.xlu2 %v484_v39, %s1367_s16 }
 0x2a6   : > { %v487_v40 = vpop.permute.xlu2 %486 }
 0x2a7   : > { %903 = vmatmul.msk.bf16.vlgmr.msra.gmra.mxu2 %vm380_vm1, %v487_v40 }
 0x32a   : > { %v500_v43 = vpop.f32.mrf.mxu2 }
 0x32b   : > { %v506_v44 = vadd.f32 %v500_v43, %v399_v42 }
 0x32d   : > { %1078 = vtanh.f32 %v506_v44  ;;  %v904_v47 = vmul.f32 -1.442695, %v506_v44 }
 0x32f   : > { %1080 = vpow2.f32 %v904_v47 }
 0x332   : > { %v502_v45 = vpop.f32.mrf.mxu2 }
 0x333   : > { %v1079_v46 = vpop.eup %1078 }
 0x334   : > { %529 = vrot.lane.b32.xlu2 %v1079_v46, %s1366_s9 }
 0x335   : > { %v1081_v48 = vpop.eup %1080 }
 0x336   : > { %v510_v49 = vadd.f32 1.0, %v1081_v48 }
 0x338   : > { %1082 = vrcp.f32 %v510_v49  ;;  %v522_v55 = vand.u32 2147483648, %v510_v49  ;;  %vm516_vm7 = vweird.f32 %v510_v49  ;;  %v520_v56 = vand.u32 2147483647, %v510_v49 }
 0x33a   : > { %v523_v58 = vor.u32 1.1754944e-38, %v522_v55  ;;  %vm521_vm9 = vcmp.eq.f32.partialorder %v520_v56, 8.507059e+37 }
 0x33e   : > { %v1083_v50 = vpop.eup %1082 }
 0x33f   : > { %v512_v51 = vmul.f32 %v1083_v50, %v510_v49  ;;  %vm517_vm6 = vweird.f32 %v1083_v50 }
 0x340   : > { %vm518_vm8 = vmor %vm516_vm7, %vm517_vm6 }
 0x341   : > { %v513_v52 = vsub.f32 1.0, %v512_v51 }
 0x343   : > { %v514_v53 = vmul.f32 %v1083_v50, %v513_v52 }
 0x345   : > { %v515_v54 = vadd.f32 %v1083_v50, %v514_v53 }
 0x347   : > { %v519_v57 = vsel %vm518_vm8, %v1083_v50, %v515_v54 }
 0x348   : > { %v524_v60 = vsel %vm521_vm9, %v523_v58, %v519_v57 }
 0x349   : > { %v527_v62 = vmul.f32 %v524_v60, %v477_v35 }
 0x38e   : > { %v530_v59 = vpop.permute.xlu2 %529 }
 0x38f   : > { %v532_v61 = vmul.f32 %v530_v59, %v524_v60 }
 0x391   : > { %534 = vrot.lane.b32.xlu0 %v532_v61, %s1367_s16 }
 0x403   : > { %v535_v63 = vpop.permute.xlu0 %534 }
 0x404   : > { %v537_v0 = vadd.f32 %v535_v63, %v527_v62 }
 0x406   : > { %1084 = vtanh.f32 %v537_v0 }
 0x40c   : > { %v1085_v1 = vpop.eup %1084 }
 0x40d   : > { %540 = vrot.lane.b32.xlu1 %v1085_v1, %s1366_s9 }
 0x47f   : > { %v541_v3 = vpop.permute.xlu1 %540 }
 0x480   : > { %v543_v4 = vmul.f32 %v541_v3, %v524_v60 }
 0x482   : > { %v544_v5 = vpack.c.bf16 %v543_v4, %v543_v4 }
 0x484   : > { %546 = vrot.lane.b32.xlu2 %v544_v5, %s1367_s16 }
 0x4de   : > { %v547_v6 = vpop.permute.xlu2 %546 }
 0x4df   : > { %905 = vmatmul.msk.bf16.vlgmr.msra.gmra.mxu3 %vm380_vm1, %v547_v6 }
 0x562   : > { %v560_v10 = vpop.f32.mrf.mxu3 }
 0x563   : > { %v566_v11 = vadd.f32 %v560_v10, %v402_v8 }
 0x565   : > { %1086 = vtanh.f32 %v566_v11  ;;  %v906_v14 = vmul.f32 -1.442695, %v566_v11 }
 0x567   : > { %1088 = vpow2.f32 %v906_v14 }
 0x56a   : > { %v562_v12 = vpop.f32.mrf.mxu3 }
 0x56b   : > { %v1087_v13 = vpop.eup %1086 }
 0x56c   : > { %589 = vrot.lane.b32.xlu0 %v1087_v13, %s1366_s9 }
 0x56d   : > { %v1089_v15 = vpop.eup %1088 }
 0x56e   : > { %v570_v16 = vadd.f32 1.0, %v1089_v15 }
 0x570   : > { %1090 = vrcp.f32 %v570_v16  ;;  %v582_v22 = vand.u32 2147483648, %v570_v16  ;;  %vm576_vm11 = vweird.f32 %v570_v16  ;;  %v580_v23 = vand.u32 2147483647, %v570_v16 }
 0x572   : > { %v583_v25 = vor.u32 1.1754944e-38, %v582_v22  ;;  %vm581_vm13 = vcmp.eq.f32.partialorder %v580_v23, 8.507059e+37 }
 0x576   : > { %v1091_v17 = vpop.eup %1090 }
 0x577   : > { %v572_v18 = vmul.f32 %v1091_v17, %v570_v16  ;;  %vm577_vm10 = vweird.f32 %v1091_v17 }
 0x578   : > { %vm578_vm12 = vmor %vm576_vm11, %vm577_vm10 }
 0x579   : > { %v573_v19 = vsub.f32 1.0, %v572_v18 }
 0x57b   : > { %v574_v20 = vmul.f32 %v1091_v17, %v573_v19 }
 0x57d   : > { %v575_v21 = vadd.f32 %v1091_v17, %v574_v20 }
 0x57f   : > { %v579_v24 = vsel %vm578_vm12, %v1091_v17, %v575_v21 }
 0x580   : > { %v584_v27 = vsel %vm581_vm13, %v583_v25, %v579_v24 }
 0x581   : > { %v587_v29 = vmul.f32 %v584_v27, %v537_v0 }
 0x5de   : > { %v590_v26 = vpop.permute.xlu0 %589 }
 0x5df   : > { %v592_v28 = vmul.f32 %v590_v26, %v584_v27 }
 0x5e1   : > { %594 = vrot.lane.b32.xlu1 %v592_v28, %s1367_s16 }
 0x653   : > { %v595_v30 = vpop.permute.xlu1 %594 }
 0x654   : > { %v597_v31 = vadd.f32 %v595_v30, %v587_v29 }
 0x656   : > { %1092 = vtanh.f32 %v597_v31 }
 0x65c   : > { %v1093_v32 = vpop.eup %1092 }
 0x65d   : > { %600 = vrot.lane.b32.xlu2 %v1093_v32, %s1366_s9 }
 0x6b7   : > { %v601_v33 = vpop.permute.xlu2 %600 }
 0x6b8   : > { %v603_v34 = vmul.f32 %v601_v33, %v584_v27 }
 0x6ba   : > { %v604_v35 = vpack.c.bf16 %v603_v34, %v603_v34 }
 0x6bc   : > { %606 = vrot.lane.b32.xlu0 %v604_v35, %s1367_s16 }
 0x72e   : > { %v607_v36 = vpop.permute.xlu0 %606 }
 0x72f   : > { %907 = vmatmul.msk.bf16.vlgmr.msrb.gmra.mxu1 %vm380_vm1, %v607_v36 }
 0x7ac   : > { %v620_v39 = vpop.f32.mrf.mxu1 }
 0x7ad   : > { %v626_v40 = vadd.f32 %v620_v39, %v404_v38 }
 0x7af   : > { %1094 = vtanh.f32 %v626_v40  ;;  %v908_v43 = vmul.f32 -1.442695, %v626_v40 }
 0x7b1   : > { %1096 = vpow2.f32 %v908_v43 }
 0x7b4   : > { %v622_v41 = vpop.f32.mrf.mxu1 }
 0x7b5   : > { %v1095_v42 = vpop.eup %1094 }
 0x7b6   : > { %649 = vrot.lane.b32.xlu1 %v1095_v42, %s1366_s9 }
 0x7b7   : > { %v1097_v44 = vpop.eup %1096 }
 0x7b8   : > { %v630_v45 = vadd.f32 1.0, %v1097_v44 }
 0x7ba   : > { %1098 = vrcp.f32 %v630_v45  ;;  %v642_v51 = vand.u32 2147483648, %v630_v45  ;;  %vm636_vm15 = vweird.f32 %v630_v45  ;;  %v640_v9 = vand.u32 2147483647, %v630_v45 }
 0x7bc   : > { %v643_v53 = vor.u32 1.1754944e-38, %v642_v51  ;;  %vm641_vm2 = vcmp.eq.f32.partialorder %v640_v9, 8.507059e+37 }
 0x7c0   : > { %v1099_v46 = vpop.eup %1098 }
 0x7c1   : > { %v632_v47 = vmul.f32 %v1099_v46, %v630_v45  ;;  %vm637_vm14 = vweird.f32 %v1099_v46 }
 0x7c2   : > { %vm638_vm0 = vmor %vm636_vm15, %vm637_vm14 }
 0x7c3   : > { %v633_v48 = vsub.f32 1.0, %v632_v47 }
 0x7c5   : > { %v634_v49 = vmul.f32 %v1099_v46, %v633_v48 }
 0x7c7   : > { %v635_v50 = vadd.f32 %v1099_v46, %v634_v49 }
 0x7c9   : > { %v639_v52 = vsel %vm638_vm0, %v1099_v46, %v635_v50 }
 0x7ca   : > { %v644_v55 = vsel %vm641_vm2, %v643_v53, %v639_v52 }
 0x7cb   : > { %v647_v57 = vmul.f32 %v644_v55, %v597_v31 }
 0x828   : > { %v650_v54 = vpop.permute.xlu1 %649 }
 0x829   : > { %v652_v56 = vmul.f32 %v650_v54, %v644_v55 }
 0x82b   : > { %654 = vrot.lane.b32.xlu2 %v652_v56, %s1367_s16 }
 0x885   : > { %v655_v58 = vpop.permute.xlu2 %654 }
 0x886   : > { %v657_v59 = vadd.f32 %v655_v58, %v647_v57 }
 0x888   : > { %1100 = vtanh.f32 %v657_v59  ;;  %670 = vrot.lane.b32.xlu2 %v657_v59, %s1368_s11 }
 0x88e   : > { %v1101_v60 = vpop.eup %1100 }
 0x88f   : > { %660 = vrot.lane.b32.xlu0 %v1101_v60, %s1366_s9 }
 0x8e2   : > { %v671_v61 = vpop.permute.xlu2 %670 }
 0x8e3   : > { %673 = vst.msk [vmem:[#allocation4] sm:$0xff] %vm380_vm1, %v671_v61 }
 0x901   : > { %v661_v62 = vpop.permute.xlu0 %660 }
 0x902   : > { %v663_v63 = vmul.f32 %v661_v62, %v644_v55 }
 0x904   : > { %665 = vrot.lane.b32.xlu1 %v663_v63, %s1367_s16 }
 0x973   : > { %677 = sbr.rel (%p909_p1) target bundleno = 2675 (0xa73), region = 64 }
 0x976   : > { %v666_v0 = vpop.permute.xlu1 %665 }
 0x977   : > { %668 = vst.msk [vmem:[#allocation3] sm:$0xff] %vm380_vm1, %v666_v0 }
 0x978   : > { %v679_v1 = vpack.c.bf16 %v663_v63, %v663_v63  ;;  %v931_v2 = vld [vmem:[#allocation11 + $0x8] sm:$0xff]  ;;  %v930_v3 = vld [vmem:[#allocation11] sm:$0xff]  ;;  %v1102_v5 = vld [vmem:[%s1736_s1 + $0x1] ss:$0 sm:$0xff] }
 0x979   : > { %709 = vmatpush.bf16.msra.mxu0 %v931_v2 }
 0x97a   : > { %686 = vrot.lane.b32.xlu0 %v679_v1, %s1369_s14 }
 0x97d   : > { %710 = vmatpush.bf16.msra.mxu0 %v930_v3 }
 0x9ec   : > { %v687_v4 = vpop.permute.xlu0 %686 }
 0x9ed   : > { %918 = vmatmul.msk.bf16.vlgmr.msra.gmra.mxu0 %vm380_vm1, %v687_v4 }
 0xa6a   : > { %v712_v6 = vpop.f32.mrf.mxu0 }
 0xa6b   : > { %v713_v7 = vadd.f32 %v1102_v5, %v712_v6 }
 0xa6d   : > { %716 = vst [vmem:[%s1600_s21] sm:$0xff] %v713_v7 }
 0xa72   : > { %v714_v8 = vpop.f32.mrf.mxu0 }
 0xa73 PF: > { %s1737_s24 = sld [smem:[#allocation19_spill]]  ;;  %s730_s6 = sshll.u32 %s1600_s21, 4  ;;  %s731_s6 = int_to_ptr.vmem [resolvable:$true] %s730_s6 }
 0xa74   : > { %s1738_s30 = sld [smem:[#allocation26_spill]]  ;;  %s718_s7 = scalar_lea.sflag [#allocation7], %s1588_s12 }
 0xa79   : > { %s920_s17 = sshll.u32 %s1737_s24, 3 }
 0xa7a   : > { %s728_s25 = scalar_lea.hbm %s1738_s30, %s920_s17  ;;  %s1243_s14 = scalar_lea.hbm %s1738_s30, 16 }
 0xa7b   : > { %s732_s29 = sshll.u32 %s728_s25, 4  ;;  %s733_s29 = int_to_ptr.hbm [resolvable:$true] %s732_s29 }
 0xa7c   : > { %s1237_s26 = sshra.s32 %s733_s29, 4  ;;  %s1238_s26 = int_to_ptr.hbm [resolvable:$true] %s1237_s26 }
 0xa7d   : > { %s1239_s9 = scalar_lea.hbm %s1238_s26, 8  ;;  %p1244_p2 = scmp.lt.s32.totalorder %s1238_s26, %s1738_s30 }
 0xa7e   : > { %p1240_p4 = scmp.ne.s32.totalorder %s1238_s26, %s1239_s9  ;;  %p1245_p7 = scmp.lt.s32.totalorder %s1243_s14, %s1239_s9 }
 0xa80   : > { %p1241_p6 = pnand %p1240_p4, %p1560_p13  ;;  %p1246_p11 = por %p1245_p7, %p1244_p2 }
 0xa82   : > { %p1242_p10 = pneg %p1241_p6 }
 0xa84   : > { %p1247_p0 = pnand %p1246_p11, %p1242_p10 }
 0xa86   : > { %1250 = shalt.err (!%p1247_p0)
}
 0xa87   : > { %944 = dma.vmem_to_hbm [thread:$0]  (%p1560_p13), %s731_s6, 128, %s733_s29, %s718_s7  }
 0xa88 PF: > { %s1739_s12 = sld [smem:[#allocation18_spill]]  ;;  %p969_p5 = scmp.ge.s32.totalorder %s1357_s28, 2 }
 0xa8a   : > { %p961_p9 = pnand %p969_p5, %p1475_p8 }
 0xa8c   : > { %p962_p12 = pneg %p961_p9 }
 0xa8e   : > { %s744_s1 = sand.u32 1, %s1739_s12  }
 0xa8f   : > { %s745_s24 = scalar_lea.sflag [#allocation7], %s744_s1 }
 0xa90   : > { %1312 = dma.done.wait (%p962_p12), %s745_s24, 128  }
 0xa91   : > { %1314 = vsyncadd (%p962_p12), %s745_s24, 4294967168  ;;  %s22_s28 = sadd.s32 1, %s1357_s28   ;;  %s1741_s24 = sld [smem:[#allocation20_spill]] }
 0xa92   : > { %p19_p3 = scmp.ge.s32.totalorder %s22_s28, 6   ;;  %s1742_s26 = sld [smem:[#allocation22_spill]] }
 0xa93   : > { %s1743_s17 = sld [smem:[#allocation23_spill]]  ;;  %s1744_s18 = smov %s1321_s19 }
 0xa94   : > { %s1745_s19 = smov %s1325_s20  ;;  %s1746_s20 = smov %s1554_s13 }
 0xa95   : > { %s1747_s21 = smov %s1333_s22  ;;  %s1748_s22 = smov %s1337_s23 }
 0xa96   : > { %s1749_s23 = smov %s1526_s5  ;;  %s1750_s25 = smov %s1353_s27 }
 0xa97   :  { %21 = sbr.rel (!%p19_p3) target bundleno = 14 (0xe), region = 116 }
 0xa99   : > { %s1751_s27 = smov %s1743_s17 }
 0xa9c   :  { %751 = vsyncpa [#allocation6], 1 }
 0xa9d   :  { %753 = vsyncpa [#allocation6 + $0x1], 1 }
 0xa9e   :  { %754 = vsyncpa [#allocation9], 1 }
 0xa9f   :  { %755 = vsyncpa [#allocation7], 1 }
 0xaa0   :  { %757 = vsyncpa [#allocation7 + $0x1], 1 }

</bundles_post_ra>
